<compile_context>
chip_gen: v7x
topology: tpu7x:2x2x1
jax: 0.10.0
libtpu: 0.0.40
codegen_flags: <defaults>
</compile_context>

<pallas_src>
import functools

import jax
import jax.numpy as jnp
from jax.experimental import pallas as pl
from jax.experimental.pallas import tpu as pltpu


def _channel_pad_kernel(y_ref, o_ref, *, pad):
    # y_ref: (tb, C, Ho, Wo)    o_ref: (tb, C + 2*pad, Ho, Wo)
    tb, c, ho, wo = y_ref.shape
    if pad > 0:  # static: only emit pad-slab stores when there is padding
        zeros = jnp.zeros((tb, pad, ho, wo), o_ref.dtype)
        o_ref[:, :pad, :, :] = zeros            # leading pad channels
        o_ref[:, pad + c:, :, :] = zeros        # trailing pad channels
    # body channels: written exactly once
    o_ref[:, pad:pad + c, :, :] = y_ref[...].astype(o_ref.dtype)


def lambda_downsample(x, planes):
    """Pallas equivalent of:
       F.pad(x[:, :, ::2, ::2], (0, 0, 0, 0, planes//4, planes//4), 'constant', 0)
    """
    n, c, h, w = x.shape
    pad = planes // 4

    # Stride-2 spatial downsample in the wrapper (XLA strided copy); keeps the
    # lane-axis compress out of the kernel.  Matches torch's `::2` for odd H/W.
    y = x[:, :, ::2, ::2]                       # (n, c, ceil(h/2), ceil(w/2))
    ho, wo = y.shape[2], y.shape[3]
    c_out = c + 2 * pad

    # Batch-block size: account for (8,128) VMEM tile padding on the last two
    # dims (narrow Wo pads to 128 lanes) so we stay under the scoped-VMEM
    # default with double-buffered in/out tiles.
    itemsize = jnp.dtype(x.dtype).itemsize
    sub_mult = {4: 8, 2: 16, 1: 32}.get(itemsize, 8)     # sublane tile per dtype
    pho = pl.cdiv(ho, sub_mult) * sub_mult
    pwo = pl.cdiv(wo, 128) * 128
    per_elem = (c + c_out) * pho * pwo * itemsize        # padded bytes / batch elem

    budget = 6 * 1024 * 1024                             # ~6 MiB of live tile per step
    tb = int(max(1, min(n, budget // max(per_elem, 1))))
    while n % tb:                                        # make tb a divisor of n
        tb -= 1
    if n >= 2 and n // tb < 2:                           # keep >= 2 steps for megacore
        tb = max(1, tb // 2)
        while n % tb:
            tb -= 1
    grid = (n // tb,)

    kernel = functools.partial(_channel_pad_kernel, pad=pad)
    out = pl.pallas_call(
        kernel,
        out_shape=jax.ShapeDtypeStruct((n, c_out, ho, wo), x.dtype),
        grid=grid,
        # Last two block dims equal the full array dims -> (8,128) rule satisfied.
        in_specs=[pl.BlockSpec((tb, c, ho, wo), lambda i: (i, 0, 0, 0))],
        out_specs=pl.BlockSpec((tb, c_out, ho, wo), lambda i: (i, 0, 0, 0)),
        compiler_params=pltpu.CompilerParams(dimension_semantics=("parallel",)),
    )(y)
    return out


if __name__ == "__main__":
    key = jax.random.PRNGKey(0)
    # Small shapes consistent with a CIFAR ResNet downsample: in_planes=4 -> planes=8.
    N, C, H, W = 2, 4, 16, 16
    planes = 2 * C  # 8 -> channel pad of planes//4 = 2 on each side
    x = jax.random.normal(key, (N, C, H, W), dtype=jnp.float32)

    fn = jax.jit(lambda_downsample, static_argnums=1)
    out = jax.block_until_ready(fn(x, planes))

    # Pure-JAX reference of the lambda's semantics.
    pad = planes // 4
    ref = jnp.pad(x[:, :, ::2, ::2], ((0, 0), (pad, pad), (0, 0), (0, 0)))

    assert out.shape == (N, C + 2 * pad, H // 2, W // 2), out.shape
    assert jnp.allclose(out, ref), "mismatch vs reference"
    print("KERNEL_OK")
</pallas_src>

<mosaic_0001>
module attributes {stable_mosaic.version = 11 : i64} {
  func.func @_channel_pad_kernel(%arg0: i32, %arg1: memref<1x4x8x8xf32, #tpu.memory_space<vmem>>, %arg2: memref<1x8x8x8xf32, #tpu.memory_space<vmem>>) attributes {dimension_semantics = [#tpu.dimension_semantics<parallel>], iteration_bounds = array<i64: 2>, scalar_prefetch = 0 : i64, scratch_operands = 0 : i64, tpu.core_type = #tpu.core_type<tc>, window_params = [{transform_indices = @transform_0, window_bounds = array<i64: 1, 4, 8, 8>}, {transform_indices = @transform_1, window_bounds = array<i64: 1, 8, 8, 8>}]} {
    %cst = arith.constant 0.000000e+00 : f32
    %0 = vector.broadcast %cst : f32 to vector<1x2x8x8xf32>
    %c0 = arith.constant 0 : index
    %c0_0 = arith.constant 0 : index
    %c0_1 = arith.constant 0 : index
    %c0_2 = arith.constant 0 : index
    %1 = vector.load %arg2[%c0, %c0_0, %c0_1, %c0_2] : memref<1x8x8x8xf32, #tpu.memory_space<vmem>>, vector<1x2x8x8xf32>
    tpu.vector_store %arg2[%c0, %c0_0, %c0_1, %c0_2], %0 {strides = array<i32>} : memref<1x8x8x8xf32, #tpu.memory_space<vmem>>, vector<1x2x8x8xf32>,
    %c0_3 = arith.constant 0 : index
    %c6 = arith.constant 6 : index
    %c0_4 = arith.constant 0 : index
    %c0_5 = arith.constant 0 : index
    %2 = vector.load %arg2[%c0_3, %c6, %c0_4, %c0_5] : memref<1x8x8x8xf32, #tpu.memory_space<vmem>>, vector<1x2x8x8xf32>
    tpu.vector_store %arg2[%c0_3, %c6, %c0_4, %c0_5], %0 {strides = array<i32>} : memref<1x8x8x8xf32, #tpu.memory_space<vmem>>, vector<1x2x8x8xf32>,
    %c0_6 = arith.constant 0 : index
    %c0_7 = arith.constant 0 : index
    %c0_8 = arith.constant 0 : index
    %c0_9 = arith.constant 0 : index
    %3 = vector.load %arg1[%c0_6, %c0_7, %c0_8, %c0_9] : memref<1x4x8x8xf32, #tpu.memory_space<vmem>>, vector<1x4x8x8xf32>
    %c0_10 = arith.constant 0 : index
    %c2 = arith.constant 2 : index
    %c0_11 = arith.constant 0 : index
    %c0_12 = arith.constant 0 : index
    %4 = vector.load %arg2[%c0_10, %c2, %c0_11, %c0_12] : memref<1x8x8x8xf32, #tpu.memory_space<vmem>>, vector<1x4x8x8xf32>
    tpu.vector_store %arg2[%c0_10, %c2, %c0_11, %c0_12], %3 {strides = array<i32>} : memref<1x8x8x8xf32, #tpu.memory_space<vmem>>, vector<1x4x8x8xf32>,
    return
  }
  func.func @transform_0(%arg0: i32) -> (i32, i32, i32, i32) {
    %c0_i32 = arith.constant 0 : i32
    %c0_i32_0 = arith.constant 0 : i32
    %c0_i32_1 = arith.constant 0 : i32
    %c0_i32_2 = arith.constant 0 : i32
    return %arg0, %c0_i32, %c0_i32_0, %c0_i32_1 : i32, i32, i32, i32
  }
  func.func @transform_1(%arg0: i32) -> (i32, i32, i32, i32) {
    %c0_i32 = arith.constant 0 : i32
    %c0_i32_0 = arith.constant 0 : i32
    %c0_i32_1 = arith.constant 0 : i32
    %c0_i32_2 = arith.constant 0 : i32
    return %arg0, %c0_i32, %c0_i32_0, %c0_i32_1 : i32, i32, i32, i32
  }
}

</mosaic_0001>

<bundles_post_ra>
// kernel: lambda_downsample.1
= control target key start
LH: loop header
LB: loop body
LE: loop exit
PB: predicated region body
PF: predicated region fallthrough
CT: control target
= control target key end

     0   :  { %6 = vsyncpa [#allocation3], 0  ;;  %s457_s0 = inlined_call_operand.vmem [shape: f32[2,4,8,8], index: 0, kind: input, shape index: {}]   ;;  %s458_s1 = inlined_call_operand.hbm [shape: f32[2,8,8,8], index: 1, kind: output, shape index: {}]  }
   0x1   :  { %8 = vsyncpa [#allocation3 + $0x1], 0  ;;  %s346_s6 = smov 0   ;;  %s348_s7 = smov 0  }
   0x2   :  { %s350_s8 = smov 0   ;;  %s352_s9 = smov 0  }
   0x3 LB: > { %s367_s10 = sadd.s32 4294967295, %s330_s9   ;;  %s206_s11 = sadd.s32 4294967294, %s330_s9   ;;  %s330_s9 = sphi %s352_s9, %s464_s9   ;;  %s326_s8 = sphi %s350_s8, %s463_s8   ;;  %s322_s7 = sphi %s348_s7, %s462_s7   ;;  %s318_s6 = sphi %s346_s6, %s461_s6  }
   0x4   : > { %s371_s12 = sadd.s32 1, %s330_s9   ;;  %s47_s13 = sadd.s32 1, %s326_s8 }
   0x5   : > { %s44_s14 = ssub.s32 %s330_s9, %s371_s12  ;;  %p57_p0 = scmp.ne.s32.totalorder %s326_s8, %s322_s7 }
   0x6   : > { %p45_p1 = scmp.eq.s32.totalorder %s44_s14, 0  ;;  %p58_p2 = scmp.eq.s32.totalorder %s367_s10, 1 }
   0x7   : > { %p63_p3 = scmp.ne.s32.totalorder %s322_s7, %s318_s6  ;;  %p64_p4 = scmp.eq.s32.totalorder %s206_s11, 1 }
   0x8   : > { %s382_s15 = scalar_select %p45_p1, %s326_s8, %s47_s13  }
   0x9   : > { %p384_p5 = por %p58_p2, %p57_p0  ;;  %p388_p6 = por %p64_p4, %p63_p3 }
   0xa   : > { %p209_p7 = scmp.ge.s32.totalorder %s330_s9, 1  ;;  %p90_p8 = scmp.lt.s32.totalorder %s330_s9, 3 }
   0xc   : > { %p91_p9 = pnand %p209_p7, %p90_p8 }
   0xd   : > { %s107_s18 = sand.u32 (!%p91_p9), 1, %s322_s7   ;;  %vm115_vm0 = vcmask (!%p91_p9), 64512   ;;  %p110_p10 = scmp.lt.s32.totalorder (!%p91_p9), %s367_s10, 1  ;;  %v332_v0 = vmov (!%p91_p9), 0.0  }
   0xe   : > { %94 = sbr.rel (%p91_p9) target bundleno = 43 (0x2b), region = 24  ;;  %s210_s19 = sshll.u32 (!%p91_p9), %s107_s18, 6 }
   0xf   : > { %s109_s20 = scalar_lea.vmem (!%p91_p9), [#allocation2], %s210_s19  ;;  %s225_s22 = sshll.u32 (!%p91_p9), %s367_s10, 10 }
  0x10   : > { %116 = vst.msk [vmem:[%s109_s20] sm:$0xff] (!%p91_p9), %vm115_vm0, %v332_v0  ;;  %117 = vst.msk [vmem:[%s109_s20 + $0x8] sm:$0xff] (!%p91_p9), %vm115_vm0, %v332_v0  ;;  %s144_s21 = sshll.u32 (!%p91_p9), %s109_s20, 4  ;;  %s405_s26 = scalar_lea.hbm (!%p91_p9), %s458_s1, %s225_s22  ;;  %s407_s21 = int_to_ptr.vmem [resolvable:$true] %s144_s21 }
  0x11   : > { %213 = vst.msk [vmem:[%s109_s20 + $0x30] sm:$0xff] (!%p91_p9), %vm115_vm0, %v332_v0  ;;  %214 = vst.msk [vmem:[%s109_s20 + $0x38] sm:$0xff] (!%p91_p9), %vm115_vm0, %v332_v0  ;;  %s416_s30 = scalar_lea.sflag (!%p91_p9), [#allocation3], %s107_s18  ;;  %s268_s2 = scalar_lea.vmem (!%p91_p9), %s407_s21, 1024 }
  0x12   : > { %p269_p11 = scmp.ne.s32.totalorder (!%p91_p9), %s407_s21, %s268_s2  ;;  %s333_s3 = smov (!%p91_p9), [#allocation2]  }
  0x13   : > { %s272_s4 = sshll.u32 (!%p91_p9), %s333_s3, 4  ;;  %s273_s4 = int_to_ptr.vmem [resolvable:$false] %s272_s4 }
  0x14   : > { %p270_p12 = pnand (!%p91_p9), %p269_p11, %p384_p5  ;;  %s274_s5 = scalar_lea.vmem (!%p91_p9), %s273_s4, 2048 }
  0x15   : > { %s466_s10 = smov (!%p110_p10, %s367_s10), 1  ;;  %p275_p0 = scmp.lt.s32.totalorder %s407_s21, %s273_s4 }
  0x16   : > { %s224_s23 = sshll.u32 %s466_s10, 5  ;;  %p271_p13 = pneg %p270_p12 }
  0x17   : > { %s114_s29 = scalar_lea.vmem %s457_s0, %s224_s23  ;;  %p276_p1 = scmp.lt.s32.totalorder %s274_s5, %s268_s2 }
  0x18   : > { %v121_v1 = vld [vmem:[%s114_s29] sm:$0xff]  ;;  %v122_v2 = vld [vmem:[%s114_s29 + $0x8] sm:$0xff]  ;;  %v123_v3 = vld [vmem:[%s114_s29 + $0x10] sm:$0xff] }
  0x19   : > { %215 = vst.msk [vmem:[%s109_s20 + $0x10] sm:$0xff] %vm115_vm0, %v121_v1  ;;  %216 = vst.msk [vmem:[%s109_s20 + $0x18] sm:$0xff] %vm115_vm0, %v122_v2  ;;  %v124_v4 = vld [vmem:[%s114_s29 + $0x18] sm:$0xff]  ;;  %p277_p2 = por %p276_p1, %p275_p0 }
  0x1a   : > { %217 = vst.msk [vmem:[%s109_s20 + $0x20] sm:$0xff] %vm115_vm0, %v123_v3  ;;  %218 = vst.msk [vmem:[%s109_s20 + $0x28] sm:$0xff] %vm115_vm0, %v124_v4 }
  0x1b   : > { %p278_p3 = pnand %p277_p2, %p271_p13 }
  0x1d   : > { %281 = shalt.err (!%p278_p3)
}
  0x1e   : > { %s282_s10 = scalar_lea.hbm %s405_s26, 1024  ;;  %s286_s14 = scalar_lea.hbm %s458_s1, 2048 }
  0x1f   : > { %p283_p4 = scmp.ne.s32.totalorder %s405_s26, %s282_s10  ;;  %p287_p9 = scmp.lt.u32.totalorder %s405_s26, %s458_s1 }
  0x20   : > { %p288_p10 = scmp.lt.u32.totalorder %s286_s14, %s282_s10  ;;  %p290_p12 = scmp.lt.u32.totalorder %s282_s10, %s405_s26 }
  0x21   : > { %p284_p7 = pnand %p283_p4, %p384_p5 }
  0x22   : > { %p289_p11 = por %p288_p10, %p287_p9 }
  0x23   : > { %p285_p8 = pneg %p284_p7 }
  0x24   : > { %p291_p13 = por %p290_p12, %p289_p11 }
  0x26   : > { %p292_p0 = pnand %p291_p13, %p285_p8 }
  0x28   : > { %295 = shalt.err (!%p292_p0)
}
  0x29   : > { %s334_s20 = smov 128   ;;  %s335_s22 = smov 8  }
  0x2a   : > { %226 = dma.vmem_to_hbm [thread:$0]  (%p384_p5), %s407_s21, 1024, %s405_s26, %s416_s30, %s334_s20, %s334_s20, %s335_s22  }
  0x2b PF: > { %p232_p1 = scmp.ge.s32.totalorder %s330_s9, 2  ;;  %s159_s23 = sand.u32 1, %s318_s6  }
  0x2c   : > { %s160_s24 = scalar_lea.sflag [#allocation3], %s159_s23 }
  0x2d   : > { %p229_p2 = pnand %p232_p1, %p388_p6 }
  0x2f   : > { %313 = dma.done.wait (!%p229_p2), %s160_s24, 1024  }
  0x30   : > { %315 = vsyncadd (!%p229_p2), %s160_s24, 4294966272  ;;  %p11_p3 = scmp.ge.s32.totalorder %s371_s12, 4   ;;  %s461_s6 = smov %s322_s7 }
  0x31   : > { %s462_s7 = smov %s326_s8  ;;  %s463_s8 = smov %s382_s15 }
  0x32   : > { %s464_s9 = smov %s371_s12  ;;  %13 = sbr.rel (!%p11_p3) target bundleno = 3 (0x3), region = 61 }
  0x39   :  { %165 = vsyncpa [#allocation3], 1 }
  0x3a   :  { %167 = vsyncpa [#allocation3 + $0x1], 1 }

</bundles_post_ra>
